<compile_context>
chip_gen: v6e
topology: v6e:2x2x1
jax: 0.10.0
libtpu: 0.0.40
codegen_flags: <defaults>
</compile_context>

<pallas_src>
import functools

import jax
import jax.numpy as jnp
from jax.experimental import pallas as pl
from jax.experimental.pallas import tpu as pltpu


def _dice_kernel(p_ref, t_ref, o_ref, acc_ref, *,
                 num_classes, ignore_id, total_pixels, tile_pixels):
    t_idx = pl.program_id(1)

    @pl.when(t_idx == 0)
    def _():
        acc_ref[...] = jnp.zeros_like(acc_ref)

    tgt = t_ref[...]                                          # (1, TP) int32

    # Global pixel index per lane: masks the ragged tail of the last tile
    # (the boundary block's out-of-range lanes contain unspecified data).
    pix = t_idx * tile_pixels + jax.lax.broadcasted_iota(
        jnp.int32, tgt.shape, 1)                              # (1, TP)
    valid = jnp.logical_and(tgt != ignore_id, pix < total_pixels)

    if num_classes <= 32:
        # Fully unrolled over classes: every operand is a lane-dense (1, TP)
        # row, so the class reduction is C-1 cheap VPU max/add ops (no XLU).
        rows = [p_ref[pl.ds(ci, 1), :].astype(jnp.float32)
                for ci in range(num_classes)]
        m = rows[0]
        for r in rows[1:]:
            m = jnp.maximum(m, r)
        s = jnp.zeros_like(m)                                 # softmax denom
        e_t = jnp.zeros_like(m)                               # exp at target
        for ci, r in enumerate(rows):
            e_c = jnp.exp(r - m)
            s = s + e_c
            e_t = jnp.where(tgt == ci, e_c, e_t)
    else:
        # Generic path for many classes (reduce along the sublane axis).
        logits = p_ref[...].astype(jnp.float32)               # (C, TP)
        m = jnp.max(logits, axis=0, keepdims=True)
        e = jnp.exp(logits - m)
        s = jnp.sum(e, axis=0, keepdims=True)
        cls = jax.lax.broadcasted_iota(jnp.int32, logits.shape, 0)
        e_t = jnp.sum(jnp.where(cls == tgt, e, 0.0), axis=0, keepdims=True)

    # one_hot is 1 only at the target class, so
    #   sum_c 2*p*t/(p+t+1e-8) = 2*p_t/(p_t + 1 + 1e-8),  p_t = e_t/s
    # which over a common denominator is a single reciprocal per pixel.
    denom = e_t + s * (1.0 + 1e-8)
    inv = pl.reciprocal(denom, approx=True)
    inv = inv * (2.0 - denom * inv)        # one Newton step -> ~f32 accuracy
    term = 2.0 * e_t * inv                                     # (1, TP)

    # jnp.where (not multiply) so garbage/NaN in masked lanes is discarded.
    acc_ref[...] += jnp.where(valid, term, 0.0)

    @pl.when(t_idx == pl.num_programs(1) - 1)
    def _():
        total = jnp.sum(acc_ref[...])                          # per-batch sum
        lane = jax.lax.broadcasted_iota(jnp.int32, o_ref.shape, 1)
        o_ref[...] = jnp.where(lane == 0, total, 0.0)


def multi_dice_loss(predict, target, ignore_id=-1, tile_pixels=8192):
    """predict: (N, C, H, W) float logits; target: (N, H, W) int labels."""
    n, c, h, w = predict.shape
    hw = h * w

    # Free reshapes: no transpose, no copies, no padding.
    pred3 = predict.reshape(n, c, hw)
    tgt3 = target.reshape(n, 1, hw).astype(jnp.int32)

    # Pixel tile: multiple of 128, no larger than needed, and small enough
    # that the double-buffered input blocks fit comfortably in VMEM
    # (v7x has 64 MiB per TensorCore; v5e/v6e have 128 MiB).
    itemsize = jnp.dtype(predict.dtype).itemsize
    vmem_budget = 8 * 1024 * 1024
    tp_cap = max(128, vmem_budget // (2 * (c * itemsize + 4)))
    tp = min(tile_pixels, tp_cap, pl.cdiv(hw, 128) * 128)
    tp = max(128, (tp // 128) * 128)

    num_tiles = pl.cdiv(hw, tp)

    kernel = functools.partial(
        _dice_kernel, num_classes=c, ignore_id=ignore_id,
        total_pixels=hw, tile_pixels=tp)

    out = pl.pallas_call(
        kernel,
        out_shape=jax.ShapeDtypeStruct((n, 1, 128), jnp.float32),
        grid_spec=pltpu.PrefetchScalarGridSpec(
            num_scalar_prefetch=0,
            grid=(n, num_tiles),
            in_specs=[
                pl.BlockSpec((pl.Squeezed(), c, tp), lambda b, t: (b, 0, t)),
                pl.BlockSpec((pl.Squeezed(), 1, tp), lambda b, t: (b, 0, t)),
            ],
            out_specs=pl.BlockSpec((pl.Squeezed(), 1, 128),
                                   lambda b, t: (b, 0, 0)),
            scratch_shapes=[pltpu.VMEM((1, tp), jnp.float32)],
        ),
        compiler_params=pltpu.CompilerParams(
            dimension_semantics=("parallel", "arbitrary")),
    )(pred3, tgt3)

    # Only lane 0 of each per-batch row is nonzero; summing everything is safe.
    return 1.0 - jnp.sum(out) / jnp.float32(c)


def multi_dice_loss_ref(predict, target, ignore_id=-1):
    """Pure-JAX reference matching the PyTorch semantics."""
    n, c, h, w = predict.shape
    pred = jnp.transpose(predict, (0, 2, 3, 1)).reshape(-1, c)
    probs = jax.nn.softmax(pred, axis=-1)
    tgt = target.reshape(-1)
    valid = (tgt != ignore_id)
    one_hot = jnp.where(valid[:, None],
                        jax.nn.one_hot(tgt, c, dtype=jnp.float32), 0.0)
    probs = jnp.where(valid[:, None], probs, 0.0)
    term = 2.0 * probs * one_hot / (probs + one_hot + 1e-8)
    dice_score = term.sum(0).mean()
    return 1.0 - dice_score


if __name__ == "__main__":
    key = jax.random.PRNGKey(0)
    k1, k2, k3, k4 = jax.random.split(key, 4)

    # Main case: N=2, C=4, H=W=16 (labels in [-1, C), -1 ignored).
    N, C, H, W = 2, 4, 16, 16
    predict = jax.random.normal(k1, (N, C, H, W), dtype=jnp.float32)
    target = jax.random.randint(k2, (N, H, W), minval=-1, maxval=C,
                                dtype=jnp.int32)

    loss = jax.block_until_ready(multi_dice_loss(predict, target))
    ref = multi_dice_loss_ref(predict, target)
    assert jnp.allclose(loss, ref, rtol=1e-4, atol=1e-5), (loss, ref)

    # Second case exercises multi-tile accumulation + ragged-tail masking
    # (H*W = 400 with a forced 128-pixel tile).
    predict2 = jax.random.normal(k3, (2, 4, 20, 20), dtype=jnp.float32)
    target2 = jax.random.randint(k4, (2, 20, 20), minval=-1, maxval=4,
                                 dtype=jnp.int32)
    loss2 = jax.block_until_ready(
        multi_dice_loss(predict2, target2, tile_pixels=128))
    ref2 = multi_dice_loss_ref(predict2, target2)
    assert jnp.allclose(loss2, ref2, rtol=1e-4, atol=1e-5), (loss2, ref2)

    print("KERNEL_OK")
</pallas_src>

<mosaic_0001>
module attributes {stable_mosaic.version = 11 : i64} {
  func.func @_dice_kernel(%arg0: i32, %arg1: i32, %arg2: memref<1x4x256xf32, #tpu.memory_space<vmem>>, %arg3: memref<1x1x256xi32, #tpu.memory_space<vmem>>, %arg4: memref<1x1x128xf32, #tpu.memory_space<vmem>>, %arg5: memref<1x256xf32, #tpu.memory_space<vmem>>) attributes {dimension_semantics = [#tpu.dimension_semantics<parallel>, #tpu.dimension_semantics<arbitrary>], iteration_bounds = array<i64: 2, 1>, scalar_prefetch = 0 : i64, scratch_operands = 1 : i64, tpu.core_type = #tpu.core_type<tc>, window_params = [{transform_indices = @transform_0, window_bounds = array<i64: 1, 4, 256>}, {transform_indices = @transform_1, window_bounds = array<i64: 1, 1, 256>}, {transform_indices = @transform_2, window_bounds = array<i64: 1, 1, 128>}]} {
    %c0_i32 = arith.constant 0 : i32
    %0 = arith.cmpi eq, %arg1, %c0_i32 : i32
    %1 = arith.extui %0 : i1 to i32
    %c0_i32_0 = arith.constant 0 : i32
    %2 = arith.cmpi ne, %1, %c0_i32_0 : i32
    scf.if %2 {
      %cst_25 = arith.constant 0.000000e+00 : f32
      %70 = vector.broadcast %cst_25 : f32 to vector<1x256xf32>
      %c0_26 = arith.constant 0 : index
      %c0_27 = arith.constant 0 : index
      %71 = vector.load %arg5[%c0_26, %c0_27] : memref<1x256xf32, #tpu.memory_space<vmem>>, vector<1x256xf32>
      tpu.vector_store %arg5[%c0_26, %c0_27], %70 {strides = array<i32>} : memref<1x256xf32, #tpu.memory_space<vmem>>, vector<1x256xf32>,
    } else {
    }
    %c0 = arith.constant 0 : index
    %c0_1 = arith.constant 0 : index
    %c0_2 = arith.constant 0 : index
    %3 = vector.load %arg3[%c0, %c0_1, %c0_2] : memref<1x1x256xi32, #tpu.memory_space<vmem>>, vector<1x1x256xi32>
    %4 = vector.shape_cast %3 : vector<1x1x256xi32> to vector<1x256xi32>
    %c256_i32 = arith.constant 256 : i32
    %5 = arith.muli %arg1, %c256_i32 : i32
    %6 = tpu.iota {dimensions = array<i32: 1>} : vector<1x256xi32>
    %7 = vector.broadcast %5 : i32 to vector<1x256xi32>
    %8 = arith.addi %7, %6 : vector<1x256xi32>
    %c-1_i32 = arith.constant -1 : i32
    %9 = vector.broadcast %c-1_i32 : i32 to vector<1x256xi32>
    %10 = arith.cmpi ne, %4, %9 : vector<1x256xi32>
    %c256_i32_3 = arith.constant 256 : i32
    %11 = vector.broadcast %c256_i32_3 : i32 to vector<1x256xi32>
    %12 = arith.cmpi slt, %8, %11 : vector<1x256xi32>
    %13 = arith.andi %10, %12 : vector<1x256xi1>
    %c0_4 = arith.constant 0 : index
    %c0_5 = arith.constant 0 : index
    %c0_6 = arith.constant 0 : index
    %14 = vector.load %arg2[%c0_4, %c0_5, %c0_6] : memref<1x4x256xf32, #tpu.memory_space<vmem>>, vector<1x1x256xf32>
    %15 = vector.shape_cast %14 : vector<1x1x256xf32> to vector<1x256xf32>
    %c0_7 = arith.constant 0 : index
    %c1 = arith.constant 1 : index
    %c0_8 = arith.constant 0 : index
    %16 = vector.load %arg2[%c0_7, %c1, %c0_8] : memref<1x4x256xf32, #tpu.memory_space<vmem>>, vector<1x1x256xf32>
    %17 = vector.shape_cast %16 : vector<1x1x256xf32> to vector<1x256xf32>
    %c0_9 = arith.constant 0 : index
    %c2 = arith.constant 2 : index
    %c0_10 = arith.constant 0 : index
    %18 = vector.load %arg2[%c0_9, %c2, %c0_10] : memref<1x4x256xf32, #tpu.memory_space<vmem>>, vector<1x1x256xf32>
    %19 = vector.shape_cast %18 : vector<1x1x256xf32> to vector<1x256xf32>
    %c0_11 = arith.constant 0 : index
    %c3 = arith.constant 3 : index
    %c0_12 = arith.constant 0 : index
    %20 = vector.load %arg2[%c0_11, %c3, %c0_12] : memref<1x4x256xf32, #tpu.memory_space<vmem>>, vector<1x1x256xf32>
    %21 = vector.shape_cast %20 : vector<1x1x256xf32> to vector<1x256xf32>
    %22 = arith.maximumf %15, %17 : vector<1x256xf32>
    %23 = arith.maximumf %22, %19 : vector<1x256xf32>
    %24 = arith.maximumf %23, %21 : vector<1x256xf32>
    %cst = arith.constant 0.000000e+00 : f32
    %25 = vector.broadcast %cst : f32 to vector<1x256xf32>
    %cst_13 = arith.constant 0.000000e+00 : f32
    %26 = vector.broadcast %cst_13 : f32 to vector<1x256xf32>
    %27 = arith.subf %15, %24 : vector<1x256xf32>
    %28 = math.exp %27 : vector<1x256xf32>
    %29 = arith.addf %25, %28 : vector<1x256xf32>
    %c0_i32_14 = arith.constant 0 : i32
    %30 = vector.broadcast %c0_i32_14 : i32 to vector<1x256xi32>
    %31 = arith.cmpi eq, %4, %30 : vector<1x256xi32>
    %32 = arith.select %31, %28, %26 : vector<1x256xi1>, vector<1x256xf32>
    %33 = arith.subf %17, %24 : vector<1x256xf32>
    %34 = math.exp %33 : vector<1x256xf32>
    %35 = arith.addf %29, %34 : vector<1x256xf32>
    %c1_i32 = arith.constant 1 : i32
    %36 = vector.broadcast %c1_i32 : i32 to vector<1x256xi32>
    %37 = arith.cmpi eq, %4, %36 : vector<1x256xi32>
    %38 = arith.select %37, %34, %32 : vector<1x256xi1>, vector<1x256xf32>
    %39 = arith.subf %19, %24 : vector<1x256xf32>
    %40 = math.exp %39 : vector<1x256xf32>
    %41 = arith.addf %35, %40 : vector<1x256xf32>
    %c2_i32 = arith.constant 2 : i32
    %42 = vector.broadcast %c2_i32 : i32 to vector<1x256xi32>
    %43 = arith.cmpi eq, %4, %42 : vector<1x256xi32>
    %44 = arith.select %43, %40, %38 : vector<1x256xi1>, vector<1x256xf32>
    %45 = arith.subf %21, %24 : vector<1x256xf32>
    %46 = math.exp %45 : vector<1x256xf32>
    %47 = arith.addf %41, %46 : vector<1x256xf32>
    %c3_i32 = arith.constant 3 : i32
    %48 = vector.broadcast %c3_i32 : i32 to vector<1x256xi32>
    %49 = arith.cmpi eq, %4, %48 : vector<1x256xi32>
    %50 = arith.select %49, %46, %44 : vector<1x256xi1>, vector<1x256xf32>
    %cst_15 = arith.constant 1.000000e+00 : f32
    %51 = vector.broadcast %cst_15 : f32 to vector<1x256xf32>
    %52 = arith.mulf %47, %51 : vector<1x256xf32>
    %53 = arith.addf %50, %52 : vector<1x256xf32>
    %54 = tpu.reciprocal %53 {approx = true} : vector<1x256xf32> -> vector<1x256xf32>
    %55 = arith.mulf %53, %54 : vector<1x256xf32>
    %cst_16 = arith.constant 2.000000e+00 : f32
    %56 = vector.broadcast %cst_16 : f32 to vector<1x256xf32>
    %57 = arith.subf %56, %55 : vector<1x256xf32>
    %58 = arith.mulf %54, %57 : vector<1x256xf32>
    %cst_17 = arith.constant 2.000000e+00 : f32
    %59 = vector.broadcast %cst_17 : f32 to vector<1x256xf32>
    %60 = arith.mulf %59, %50 : vector<1x256xf32>
    %61 = arith.mulf %60, %58 : vector<1x256xf32>
    %c0_18 = arith.constant 0 : index
    %c0_19 = arith.constant 0 : index
    %62 = vector.load %arg5[%c0_18, %c0_19] : memref<1x256xf32, #tpu.memory_space<vmem>>, vector<1x256xf32>
    %cst_20 = arith.constant 0.000000e+00 : f32
    %63 = vector.broadcast %cst_20 : f32 to vector<1x256xf32>
    %64 = arith.select %13, %61, %63 : vector<1x256xi1>, vector<1x256xf32>
    %65 = arith.addf %62, %64 : vector<1x256xf32>
    %c0_21 = arith.constant 0 : index
    %c0_22 = arith.constant 0 : index
    %66 = vector.load %arg5[%c0_21, %c0_22] : memref<1x256xf32, #tpu.memory_space<vmem>>, vector<1x256xf32>
    tpu.vector_store %arg5[%c0_21, %c0_22], %65 {strides = array<i32>} : memref<1x256xf32, #tpu.memory_space<vmem>>, vector<1x256xf32>,
    %c0_i32_23 = arith.constant 0 : i32
    %67 = arith.cmpi eq, %arg1, %c0_i32_23 : i32
    %68 = arith.extui %67 : i1 to i32
    %c0_i32_24 = arith.constant 0 : i32
    %69 = arith.cmpi ne, %68, %c0_i32_24 : i32
    scf.if %69 {
      %c0_25 = arith.constant 0 : index
      %c0_26 = arith.constant 0 : index
      %70 = vector.load %arg5[%c0_25, %c0_26] : memref<1x256xf32, #tpu.memory_space<vmem>>, vector<1x256xf32>
      %71 = vector.shape_cast %70 : vector<1x256xf32> to vector<1x1x256xf32>
      %cst_27 = arith.constant dense<0.000000e+00> : vector<1xf32>
      %72 = vector.multi_reduction <add>, %71, %cst_27 [1, 2] : vector<1x1x256xf32> to vector<1xf32>
      %73 = vector.shape_cast %72 : vector<1xf32> to vector<1x1x1xf32>
      %74 = vector.extract %73[0, 0, 0] : f32 from vector<1x1x1xf32>
      %75 = tpu.iota {dimensions = array<i32: 1>} : vector<1x128xi32>
      %c0_i32_28 = arith.constant 0 : i32
      %76 = vector.broadcast %c0_i32_28 : i32 to vector<1x128xi32>
      %77 = arith.cmpi eq, %75, %76 : vector<1x128xi32>
      %cst_29 = arith.constant 0.000000e+00 : f32
      %78 = vector.broadcast %74 : f32 to vector<1x128xf32>
      %79 = vector.broadcast %cst_29 : f32 to vector<1x128xf32>
      %80 = arith.select %77, %78, %79 : vector<1x128xi1>, vector<1x128xf32>
      %c0_30 = arith.constant 0 : index
      %c0_31 = arith.constant 0 : index
      %c0_32 = arith.constant 0 : index
      %81 = vector.load %arg4[%c0_30, %c0_31, %c0_32] : memref<1x1x128xf32, #tpu.memory_space<vmem>>, vector<1x1x128xf32>
      %82 = vector.shape_cast %81 : vector<1x1x128xf32> to vector<1x128xf32>
      %83 = vector.shape_cast %80 : vector<1x128xf32> to vector<1x1x128xf32>
      tpu.vector_store %arg4[%c0_30, %c0_31, %c0_32], %83 {strides = array<i32>} : memref<1x1x128xf32, #tpu.memory_space<vmem>>, vector<1x1x128xf32>,
    } else {
    }
    return
  }
  func.func @transform_0(%arg0: i32, %arg1: i32) -> (i32, i32, i32) {
    %c0_i32 = arith.constant 0 : i32
    %c0_i32_0 = arith.constant 0 : i32
    return %arg0, %c0_i32, %arg1 : i32, i32, i32
  }
  func.func @transform_1(%arg0: i32, %arg1: i32) -> (i32, i32, i32) {
    %c0_i32 = arith.constant 0 : i32
    %c0_i32_0 = arith.constant 0 : i32
    return %arg0, %c0_i32, %arg1 : i32, i32, i32
  }
  func.func @transform_2(%arg0: i32, %arg1: i32) -> (i32, i32, i32) {
    %c0_i32 = arith.constant 0 : i32
    %c0_i32_0 = arith.constant 0 : i32
    %c0_i32_1 = arith.constant 0 : i32
    return %arg0, %c0_i32, %c0_i32_0 : i32, i32, i32
  }
}

</mosaic_0001>

<bundles_post_ra>
// kernel: tpu_custom_call.1
= control target key start
LH: loop header
LB: loop body
LE: loop exit
PB: predicated region body
PF: predicated region fallthrough
CT: control target
= control target key end

     0   :  { %7 = vsyncpa [#allocation4], 0  ;;  %s903_s0 = inlined_call_operand.hbm [shape: f32[2,4,256], index: 0, kind: input, shape index: {}]   ;;  %s904_s1 = inlined_call_operand.hbm [shape: s32[2,1,256], index: 1, kind: input, shape index: {}]   ;;  %s905_s2 = inlined_call_operand.hbm [shape: f32[2,1,128], index: 2, kind: output, shape index: {}]  }
   0x1   :  { %9 = vsyncpa [#allocation4 + $0x1], 0 }
   0x2   :  { %10 = vsyncpa [#allocation7], 0 }
   0x3   :  { %12 = vsyncpa [#allocation7 + $0x1], 0 }
   0x4   :  { %13 = vsyncpa [#allocation5], 0 }
   0x5   :  { %15 = vsyncpa [#allocation5 + $0x1], 0  ;;  %s721_s9 = smov 0   ;;  %s723_s10 = smov 0  }
   0x6   :  { %s725_s11 = smov 0   ;;  %s727_s12 = smov 0  }
   0x7   :  { %s729_s13 = smov 0   ;;  %s731_s14 = smov 0  }
   0x8 LB: > { %s455_s15 = sadd.s32 4294967295, %s698_s14   ;;  %s456_s16 = sadd.s32 4294967294, %s698_s14   ;;  %s698_s14 = sphi %s731_s14, %s21_s14   ;;  %s694_s13 = sphi %s729_s13, %s919_s13   ;;  %s690_s12 = sphi %s727_s12, %s918_s12   ;;  %s686_s11 = sphi %s725_s11, %s917_s11   ;;  %s682_s10 = sphi %s723_s10, %s916_s10   ;;  %s678_s9 = sphi %s721_s9, %s915_s9  }
   0x9   : > { %s33_s17 = sadd.s32 1, %s694_s13  ;;  %s42_s18 = sadd.s32 1, %s686_s11 }
   0xa   : > { %p35_p0 = scmp.ge.s32.totalorder %s33_s17, 2  ;;  %p49_p1 = scmp.ne.s32.totalorder %s686_s11, %s682_s10 }
   0xb   : > { %p50_p2 = scmp.eq.s32.totalorder %s698_s14, 0  ;;  %p55_p3 = scmp.ne.s32.totalorder %s682_s10, %s678_s9 }
   0xc   : > { %s921_s17 = smov (%p35_p0, %s33_s17), 0  ;;  %p56_p5 = scmp.eq.s32.totalorder %s455_s15, 0 }
   0xd   : > { %p762_p4 = por %p50_p2, %p49_p1  ;;  %s37_s20 = ssub.s32 %s694_s13, %s921_s17 }
   0xe   : > { %p107_p6 = scmp.eq.s32.totalorder %s455_s15, 1  ;;  %p40_p7 = scmp.eq.s32.totalorder %s37_s20, 0 }
   0xf   : > { %p768_p8 = por %p56_p5, %p55_p3  ;;  %p113_p10 = scmp.eq.s32.totalorder %s456_s16, 1 }
  0x10   : > { %p772_p9 = por %p107_p6, %p49_p1  ;;  %p495_p13 = scmp.lt.s32.totalorder %s698_s14, 2 }
  0x11   : > { %s777_s23 = scalar_select %p40_p7, %s686_s11, %s42_s18  }
  0x12   : > { %p779_p11 = por %p113_p10, %p55_p3  ;;  %s786_s25 = sand.u32 1, %s686_s11  }
  0x13   : > { %s459_s26 = sshll.u32 %s786_s25, 3  ;;  %s474_s27 = sshll.u32 %s694_s13, 7 }
  0x14   : > { %s145_s30 = scalar_lea.hbm %s903_s0, %s474_s27  ;;  %s137_s3 = scalar_lea.vmem [#allocation3], %s459_s26 }
  0x15   : > { %s147_s4 = sshll.u32 %s137_s3, 4  ;;  %p795_p0 = pnand %p495_p13, %p762_p4  ;;  %s148_s4 = int_to_ptr.vmem [resolvable:$true] %s147_s4 }
  0x16   : > { %p465_p1 = scmp.ge.s32.totalorder %s698_s14, 1  ;;  %p173_p2 = scmp.lt.s32.totalorder %s698_s14, 3 }
  0x17   : > { %s134_s6 = scalar_lea.sflag [#allocation4], %s786_s25  ;;  %p560_p3 = pneg %p795_p0 }
  0x18   : > { %s571_s7 = scalar_lea.vmem %s148_s4, 128  ;;  %s700_s8 = smov [#allocation3]  }
  0x19   : > { %p572_p5 = scmp.ne.s32.totalorder %s148_s4, %s571_s7  ;;  %s576_s15 = sshll.u32 %s700_s8, 4  ;;  %s577_s15 = int_to_ptr.vmem [resolvable:$false] %s576_s15 }
  0x1a   : > { %s578_s16 = scalar_lea.vmem %s577_s15, 256  ;;  %p579_p4 = scmp.lt.s32.totalorder %s148_s4, %s577_s15 }
  0x1b   : > { %p574_p6 = pnand %p572_p5, %p560_p3  ;;  %p580_p10 = scmp.lt.s32.totalorder %s578_s16, %s571_s7 }
  0x1d   : > { %p575_p7 = pneg %p574_p6  ;;  %p581_p13 = por %p580_p10, %p579_p4 }
  0x1f   : > { %p582_p12 = pnand %p581_p13, %p575_p7 }
  0x21   : > { %585 = shalt.err (!%p582_p12)
}
  0x22   : > { %487 = dma.hbm_to_vmem [thread:$0]  (!%p795_p0), %s145_s30, 128, %s148_s4, %s134_s6  }
  0x23   : > { %p813_p5 = pnand %p465_p1, %p173_p2  ;;  %s462_s19 = sshll.u32 %s786_s25, 1 }
  0x24   : > { %s475_s20 = sshll.u32 %s694_s13, 5  ;;  %s158_s29 = scalar_lea.vmem [#allocation6], %s462_s19 }
  0x25   : > { %s166_s28 = scalar_lea.hbm %s904_s1, %s475_s20  ;;  %s168_s3 = sshll.u32 %s158_s29, 4  ;;  %s169_s3 = int_to_ptr.vmem [resolvable:$true] %s168_s3 }
  0x26   : > { %s155_s7 = scalar_lea.sflag [#allocation7], %s786_s25  ;;  %s599_s8 = scalar_lea.vmem %s169_s3, 32 }
  0x27   : > { %p600_p12 = scmp.ne.s32.totalorder %s169_s3, %s599_s8  ;;  %s701_s30 = smov [#allocation6]  }
  0x28   : > { %s604_s4 = sshll.u32 %s701_s30, 4  ;;  %s605_s4 = int_to_ptr.vmem [resolvable:$false] %s604_s4 }
  0x29   : > { %p602_p6 = pnand %p600_p12, %p560_p3  ;;  %s606_s6 = scalar_lea.vmem %s605_s4, 64 }
  0x2a   : > { %p607_p1 = scmp.lt.s32.totalorder %s169_s3, %s605_s4  ;;  %p608_p2 = scmp.lt.s32.totalorder %s606_s6, %s599_s8 }
  0x2b   : > { %p603_p7 = pneg %p602_p6 }
  0x2c   : > { %p609_p4 = por %p608_p2, %p607_p1 }
  0x2e   : > { %p610_p10 = pnand %p609_p4, %p603_p7 }
  0x30   : > { %613 = shalt.err (!%p610_p10)
}
  0x31   : > { %490 = dma.hbm_to_vmem [thread:$0]  (!%p795_p0), %s166_s28, 32, %s169_s3, %s155_s7  }
  0x32   : > { %177 = sbr.rel (%p813_p5) target bundleno = 347 (0x15b), region = 28  ;;  %s831_s25 = sand.u32 (!%p813_p5), 1, %s682_s10  }
  0x33   : > { %s466_s15 = sshll.u32 (!%p813_p5), %s831_s25, 3  ;;  %s180_s16 = scalar_lea.sflag (!%p813_p5), [#allocation4], %s831_s25 }
  0x34   : > { %s183_s19 = scalar_lea.vmem (!%p813_p5), [#allocation3], %s466_s15 }
  0x37   : > { %665 = dma.done.wait (%p768_p8), %s180_s16, 128  }
  0x38   : > { %667 = vsyncadd (%p768_p8), %s180_s16, 4294967168  ;;  %s467_s5 = sshll.u32 %s831_s25, 1  ;;  %s189_s18 = scalar_lea.sflag [#allocation7], %s831_s25 }
  0x39   : > { %s192_s20 = scalar_lea.vmem [#allocation6], %s467_s5 }
  0x3a   : > { %669 = dma.done.wait (%p768_p8), %s189_s18, 32  }
  0x3b   : > { %671 = vsyncadd (%p768_p8), %s189_s18, 4294967264  ;;  %v223_v0 = vlaneseq  ;;  %v702_v2 = vmov 0.0   ;;  %v258_v3 = vld [vmem:[%s183_s19] ss:$4 sm:$0x3]  ;;  %v704_v35 = vmov 1  }
  0x3c   : > { %v468_v4 = vld [vmem:[%s183_s19 + $0x1] ss:$4 sm:$0x3]  ;;  %v469_v5 = vld [vmem:[%s183_s19 + $0x2] ss:$4 sm:$0x3]  ;;  %v241_v36 = vcombine.low %v704_v35, %v704_v35 }
  0x3d   : > { %vm846_vm0 = vcmp.lt.s32.totalorder %v223_v0, 256  ;;  %v265_v6 = vmax.f32 %v258_v3, %v468_v4  ;;  %v470_v7 = vld [vmem:[%s183_s19 + $0x3] ss:$4 sm:$0x3]  ;;  %v228_v18 = vld [vmem:[%s192_s20] sm:$0x3] }
  0x3e   : > { %227 = vst.msk [vmem:[#allocation2] sm:$0x3] %vm846_vm0, %v702_v2  ;;  %vm272_vm1 = vcmp.eq.s32.totalorder %v228_v18, 0  ;;  %vm278_vm2 = vcmp.eq.s32.totalorder %v228_v18, 1  ;;  %vm284_vm3 = vcmp.eq.s32.totalorder %v228_v18, 2  ;;  %vm290_vm4 = vcmp.eq.s32.totalorder %v228_v18, 3 }
  0x3f   : > { %v266_v8 = vmax.f32 %v265_v6, %v469_v5  ;;  %v703_v29 = vmov 1966171168   ;;  %v246_v34 = vshrl.u32 %v223_v0, 7  ;;  %vm236_vm5 = vcmp.ne.s32.totalorder %v228_v18, 4294967295  ;;  %s471_s21 = sshll.u32 %s690_s12, 4  ;;  %s216_s26 = scalar_lea.vmem [#allocation8], %s831_s25 }
  0x40   : > { %v243_v30 = vunpack.c.l.s4 %v703_v29  ;;  %vm322_vm8 = vcmask 1040384   ;;  %v231_v1 = vand.u32 127, %v223_v0  ;;  %s352_s27 = sshll.u32 %s216_s26, 4  ;;  %s861_s7 = scalar_lea.hbm %s905_s2, %s471_s21  ;;  %s353_s27 = int_to_ptr.vmem [resolvable:$true] %s352_s27 }
  0x41   : > { %v267_v9 = vmax.f32 %v266_v8, %v470_v7  ;;  %v314_v49 = vsub.s32 0, %v246_v34  ;;  %v318_v50 = vsub.s32 1, %v246_v34  ;;  %s340_s8 = scalar_lea.sflag [#allocation5], %s831_s25  ;;  %s614_s30 = scalar_lea.vmem %s353_s27, 16 }
  0x42   : > { %v244_v33 = vunpack.c.0.s8 %v243_v30  ;;  %vm335_vm9 = vcmp.eq.s32.totalorder %v231_v1, 0  ;;  %p615_p8 = scmp.ne.s32.totalorder %s353_s27, %s614_s30  ;;  %s705_s12 = smov [#allocation8]  }
  0x43   : > { %v268_v10 = vsub.f32 %v258_v3, %v267_v9  ;;  %v274_v11 = vsub.f32 %v468_v4, %v267_v9  ;;  %v280_v12 = vsub.f32 %v469_v5, %v267_v9  ;;  %v286_v13 = vsub.f32 %v470_v7, %v267_v9  ;;  %s618_s4 = sshll.u32 %s705_s12, 4  ;;  %s619_s4 = int_to_ptr.vmem [resolvable:$false] %s618_s4 }
  0x44   : > { %v247_v37 = vsub.s32 %v244_v33, %v246_v34  ;;  %p616_p0 = pnand %p615_p8, %p772_p9  ;;  %s620_s6 = scalar_lea.vmem %s619_s4, 32 }
  0x45   : > { %v269_v14 = vmul.f32 1.442695, %v268_v10  ;;  %v275_v15 = vmul.f32 1.442695, %v274_v11  ;;  %v281_v16 = vmul.f32 1.442695, %v280_v12  ;;  %p621_p13 = scmp.lt.s32.totalorder %s353_s27, %s619_s4  ;;  %p622_p5 = scmp.lt.s32.totalorder %s620_s6, %s614_s30 }
  0x46   : > { %v287_v17 = vmul.f32 1.442695, %v286_v13  ;;  %v248_v38 = vrot.slane %v241_v36, %v247_v37  ;;  %v299_v46 = vld [vmem:[#allocation2] sm:$0x3]  ;;  %p617_p3 = pneg %p616_p0 }
  0x47   : > { %548 = vpow2.f32 %v269_v14  ;;  %p623_p12 = por %p622_p5, %p621_p13 }
  0x48   : > { %550 = vpow2.f32 %v275_v15  ;;  %v255_v39 = vrot.slane %v248_v38, %v247_v37 }
  0x49   : > { %552 = vpow2.f32 %v281_v16  ;;  %p624_p6 = pnand %p623_p12, %p617_p3 }
  0x4a   : > { %554 = vpow2.f32 %v287_v17  ;;  %vm256_vm6 = vcmp.ne.s32.totalorder %v255_v39, 0 }
  0x4b   : > { %vm257_vm7 = vmand %vm236_vm5, %vm256_vm6 }
  0x54   : > { %v549_v19 = vpop.eup %548 }
  0x55   : > { %v551_v20 = vpop.eup %550  ;;  %v273_v21 = vsel %vm272_vm1, %v549_v19, 0.0 }
  0x56   : > { %v553_v22 = vpop.eup %552  ;;  %v277_v23 = vadd.f32 %v551_v20, %v549_v19  ;;  %v279_v24 = vsel %vm278_vm2, %v551_v20, %v273_v21 }
  0x57   : > { %v555_v25 = vpop.eup %554  ;;  %v285_v26 = vsel %vm284_vm3, %v553_v22, %v279_v24 }
  0x58   : > { %v283_v27 = vadd.f32 %v553_v22, %v277_v23  ;;  %v291_v28 = vsel %vm290_vm4, %v555_v25, %v285_v26 }
  0x59   : > { %v297_v43 = vmul.f32 2.0, %v291_v28 }
  0x5a   : > { %v289_v31 = vadd.f32 %v555_v25, %v283_v27 }
  0x5c   : > { %v292_v32 = vadd.f32 %v291_v28, %v289_v31 }
  0x5e   : > { %556 = vrcp.f32 %v292_v32 }
  0x6b   : > { %v557_v40 = vpop.eup %556 }
  0x6c   : > { %v294_v41 = vmul.f32 %v557_v40, %v292_v32 }
  0x6e   : > { %v295_v42 = vsub.f32 2.0, %v294_v41 }
  0x70   : > { %v296_v44 = vmul.f32 %v557_v40, %v295_v42 }
  0x72   : > { %v298_v45 = vmul.f32 %v297_v43, %v296_v44 }
  0x74   : > { %v300_v47 = vsel %vm257_vm7, %v298_v45, 0.0 }
  0x75   : > { %v301_v48 = vadd.f32 %v300_v47, %v299_v46 }
  0x77   : > { %306 = vst.msk [vmem:[#allocation2] sm:$0x3] %vm846_vm0, %v301_v48 }
  0x7e   : > { %v310_v51 = vld [vmem:[#allocation2] sm:$0x3] }
  0x7f   : > { %v315_v52 = vrot.slane %v310_v51, %v314_v49  ;;  %v319_v53 = vrot.slane %v310_v51, %v318_v50 }
  0x81   : > { %v323_v54 = vsel %vm322_vm8, %v315_v52, 0.0  ;;  %v324_v55 = vsel %vm322_vm8, %v319_v53, 0.0 }
  0x82   : > { %v325_v56 = vadd.f32 %v324_v55, %v323_v54 }
  0x84   : > { %326 = vadd.xlane.f32.xlu0 %v325_v56 }
 0x10d   : > { %v327_v57 = vpop.xlane.xlu0 %326 }
 0x10e   : > { %v328_v58 = vrot.slane %v327_v57, 4 }
 0x110   : > { %v329_v59 = vadd.f32 %v328_v58, %v327_v57 }
 0x112   : > { %v330_v60 = vrot.slane %v329_v59, 2 }
 0x114   : > { %v331_v61 = vadd.f32 %v330_v60, %v329_v59 }
 0x116   : > { %v332_v62 = vrot.slane %v331_v61, 1 }
 0x118   : > { %v333_v63 = vadd.f32 %v332_v62, %v331_v61 }
 0x11a   : > { %476 = vpush %v333_v63 }
 0x14b   : > { %s477_s28 = spop %476 }
 0x14c   : > { %v336_v2 = vstv %s477_s28 }
 0x14d   : > { %v337_v3 = vsel %vm335_vm9, %v336_v2, 0.0 }
 0x14e   : > { %338 = vst [vmem:[%s216_s26] sm:$0x1] %v337_v3 }
 0x14f   : > { %627 = shalt.err (!%p624_p6)
}
 0x150   : > { %s628_s15 = scalar_lea.hbm %s861_s7, 16  ;;  %s632_s19 = scalar_lea.hbm %s905_s2, 32 }
 0x151   : > { %p629_p7 = scmp.ne.s32.totalorder %s861_s7, %s628_s15  ;;  %p633_p4 = scmp.lt.s32.totalorder %s861_s7, %s905_s2 }
 0x152   : > { %p634_p10 = scmp.lt.s32.totalorder %s632_s19, %s628_s15 }
 0x153   : > { %p630_p1 = pnand %p629_p7, %p772_p9 }
 0x154   : > { %p635_p8 = por %p634_p10, %p633_p4 }
 0x155   : > { %p631_p2 = pneg %p630_p1 }
 0x157   : > { %p636_p0 = pnand %p635_p8, %p631_p2 }
 0x159   : > { %639 = shalt.err (!%p636_p0)
}
 0x15a   : > { %482 = dma.vmem_to_hbm [thread:$0]  (%p772_p9), %s353_s27, 16, %s861_s7, %s340_s8  }
 0x15b PF: > { %s364_s20 = sand.u32 1, %s678_s9   ;;  %p914_p3 = scmp.ge.s32.totalorder %s698_s14, 2 }
 0x15c   : > { %s365_s21 = scalar_lea.sflag [#allocation5], %s364_s20 }
 0x15d   : > { %p492_p13 = pnand %p914_p3, %p779_p11 }
 0x15f   : > { %p493_p5 = pneg %p492_p13 }
 0x161   : > { %673 = dma.done.wait (%p493_p5), %s365_s21, 16  }
 0x162   : > { %675 = vsyncadd (%p493_p5), %s365_s21, 4294967280  ;;  %s21_s14 = sadd.s32 1, %s698_s14   ;;  %s915_s9 = smov %s682_s10 }
 0x163   : > { %p18_p12 = scmp.ge.s32.totalorder %s21_s14, 4   ;;  %s916_s10 = smov %s686_s11 }
 0x164   : > { %s917_s11 = smov %s777_s23  ;;  %s918_s12 = smov %s694_s13 }
 0x165   : > { %s919_s13 = smov %s921_s17  ;;  %20 = sbr.rel (!%p18_p12) target bundleno = 8 (0x8), region = 97 }
 0x16a   :  { %369 = vsyncpa [#allocation4], 1 }
 0x16b   :  { %371 = vsyncpa [#allocation4 + $0x1], 1 }
 0x16c   :  { %372 = vsyncpa [#allocation7], 1 }
 0x16d   :  { %374 = vsyncpa [#allocation7 + $0x1], 1 }
 0x16e   :  { %375 = vsyncpa [#allocation5], 1 }
 0x16f   :  { %377 = vsyncpa [#allocation5 + $0x1], 1 }

</bundles_post_ra>
